<compile_context>
chip_gen: v7x
topology: tpu7x:2x2x1
jax: 0.10.0
libtpu: 0.0.40
codegen_flags: <defaults>
</compile_context>

<pallas_src>
import functools

import jax
import jax.numpy as jnp
from jax.experimental import pallas as pl
from jax.experimental.pallas import tpu as pltpu


def _round_up(x: int, m: int) -> int:
    return (x + m - 1) // m * m


def _mlp_kernel(*refs, num_layers: int):
    """Fully fused MLP on one batch tile.

    refs = (x_ref, w1_ref, b1_ref, ..., wL_ref, bL_ref, o_ref).
    Linear + ReLU for all layers except the last (Linear only), chained in-kernel
    so hidden activations never touch HBM. The last weight/bias are zero-padded
    to a 128-lane output so the final store is unmasked.
    """
    x_ref = refs[0]
    o_ref = refs[-1]
    h = x_ref[...]
    for i in range(num_layers):
        w_ref = refs[1 + 2 * i]
        b_ref = refs[2 + 2 * i]
        h = jnp.dot(h, w_ref[...], preferred_element_type=jnp.float32) + b_ref[...]
        if i != num_layers - 1:
            h = jnp.maximum(h, 0.0)
    o_ref[...] = h.astype(o_ref.dtype)


def init_dqn_params(config, key):
    """Deterministic init matching nn.Linear's default U(-1/sqrt(in), 1/sqrt(in))."""
    layer_sizes = list(config["layer_sizes"])
    layer_sizes.insert(0, config["observation_space"])
    layer_sizes.append(config["action_space"])
    params = []
    for i in range(1, len(layer_sizes)):
        fan_in, fan_out = layer_sizes[i - 1], layer_sizes[i]
        key, kw, kb = jax.random.split(key, 3)
        bound = 1.0 / (fan_in ** 0.5)
        # Stored directly as (in, out) == transpose of PyTorch's (out, in).
        w = jax.random.uniform(kw, (fan_in, fan_out), jnp.float32, -bound, bound)
        # Bias stored as (1, out) so the kernel operand layout is fixed per layer.
        b = jax.random.uniform(kb, (1, fan_out), jnp.float32, -bound, bound)
        params.append((w, b))
    return params


def dqn_forward(params, x, *, tile_m: int = 2048):
    """Forward pass of DQN via a single fused pallas_call, gridded over batch."""
    num_layers = len(params)
    M, K0 = x.shape
    N_out = params[-1][0].shape[1]
    N_pad = _round_up(N_out, 128)  # lane-dense output width

    # --- Divisor-friendly batch tiling -------------------------------------
    # Pick the number of grid steps first, then size the tile so padding is a
    # few rows at most. Round multi-step grids up to an even step count so the
    # "parallel" axis balances across v7x's two TensorCores.
    num_tiles = max(1, -(-M // tile_m))
    if num_tiles > 1 and num_tiles % 2 == 1:
        num_tiles += 1
    tile = _round_up(-(-M // num_tiles), 8)  # >= 8 sublanes for f32
    Mp = _round_up(M, tile)
    if Mp != M:
        # With divisor-friendly tiles this pad is at most a few sublane groups.
        x = jnp.pad(x, ((0, Mp - M), (0, 0)))
    grid = (Mp // tile,)

    # --- Lane-dense output: zero-pad the last layer to N_pad lanes ----------
    last_w, last_b = params[-1]
    if N_pad != N_out:
        last_w = jnp.pad(last_w, ((0, 0), (0, N_pad - N_out)))
        last_b = jnp.pad(last_b, ((0, 0), (0, N_pad - N_out)))
    kernel_params = list(params[:-1]) + [(last_w, last_b)]

    # Build specs: x is tiled over batch; every weight/bias is a single
    # full-extent block pinned at (0, 0) so it stays resident in VMEM.
    # TODO(synk): if hidden widths ever reach ~1k, tile the weight K/N axes
    # instead of pinning full-extent blocks (v7x has only 64 MiB VMEM).
    in_specs = [pl.BlockSpec((tile, K0), lambda i: (i, 0))]
    flat_args = [x]
    flops = 0
    bytes_accessed = Mp * K0 * x.dtype.itemsize
    for w, b in kernel_params:
        k, n = w.shape
        in_specs.append(pl.BlockSpec((k, n), lambda i: (0, 0)))
        in_specs.append(pl.BlockSpec((1, n), lambda i: (0, 0)))
        flat_args.append(w)
        flat_args.append(b)
        flops += 2 * Mp * k * n
        bytes_accessed += (w.size + b.size) * w.dtype.itemsize
    bytes_accessed += Mp * N_pad * x.dtype.itemsize

    out = pl.pallas_call(
        functools.partial(_mlp_kernel, num_layers=num_layers),
        out_shape=jax.ShapeDtypeStruct((Mp, N_pad), x.dtype),
        grid=grid,
        in_specs=in_specs,
        out_specs=pl.BlockSpec((tile, N_pad), lambda i: (i, 0)),
        compiler_params=pltpu.CompilerParams(
            dimension_semantics=("parallel",),  # shard batch tiles across TCs (v7x)
        ),
        cost_estimate=pl.CostEstimate(
            flops=flops, transcendentals=0, bytes_accessed=bytes_accessed),
    )(*flat_args)
    # Slice off padded batch rows and padded action lanes (so downstream argmax
    # over actions only sees real Q-values).
    return out[:M, :N_out]


def dqn_forward_ref(params, x):
    """Pure-JAX reference for correctness checking."""
    n = len(params)
    for i, (w, b) in enumerate(params):
        x = x @ w + b
        if i != n - 1:
            x = jnp.maximum(x, 0.0)
    return x


if __name__ == "__main__":
    config = {
        "observation_space": 16,
        "layer_sizes": [32, 32],
        "action_space": 4,
    }
    key = jax.random.PRNGKey(0)
    key, kx = jax.random.split(key)

    batch = 2
    x = jax.random.normal(kx, (batch, config["observation_space"]), jnp.float32)

    params = init_dqn_params(config, key)

    out = jax.jit(dqn_forward)(params, x)
    out = jax.block_until_ready(out)

    ref = dqn_forward_ref(params, x)
    assert out.shape == (batch, config["action_space"]), out.shape
    assert jnp.allclose(out, ref, atol=1e-5, rtol=1e-5), "mismatch vs reference"

    # Also exercise a multi-step grid with a ragged batch (padding + even steps).
    key, kx2 = jax.random.split(key)
    x2 = jax.random.normal(kx2, (1030, config["observation_space"]), jnp.float32)
    fwd_small_tiles = jax.jit(functools.partial(dqn_forward, tile_m=256))
    out2 = jax.block_until_ready(fwd_small_tiles(params, x2))
    ref2 = dqn_forward_ref(params, x2)
    assert out2.shape == (1030, config["action_space"]), out2.shape
    assert jnp.allclose(out2, ref2, atol=1e-5, rtol=1e-5), "mismatch vs reference (batched)"

    # And the default (single big tile) path on the same ragged batch.
    out3 = jax.block_until_ready(jax.jit(dqn_forward)(params, x2))
    assert jnp.allclose(out3, ref2, atol=1e-5, rtol=1e-5), "mismatch vs reference (big tile)"

    print("KERNEL_OK")
</pallas_src>

<mosaic_0001>
module attributes {stable_mosaic.version = 11 : i64} {
  func.func @_mlp_kernel(%arg0: i32, %arg1: memref<8x16xf32, #tpu.memory_space<vmem>>, %arg2: memref<16x32xf32, #tpu.memory_space<vmem>>, %arg3: memref<1x32xf32, #tpu.memory_space<vmem>>, %arg4: memref<32x32xf32, #tpu.memory_space<vmem>>, %arg5: memref<1x32xf32, #tpu.memory_space<vmem>>, %arg6: memref<32x128xf32, #tpu.memory_space<vmem>>, %arg7: memref<1x128xf32, #tpu.memory_space<vmem>>, %arg8: memref<8x128xf32, #tpu.memory_space<vmem>>) attributes {dimension_semantics = [#tpu.dimension_semantics<parallel>], iteration_bounds = array<i64: 1>, scalar_prefetch = 0 : i64, scratch_operands = 0 : i64, tpu.core_type = #tpu.core_type<tc>, window_params = [{transform_indices = @transform_0, window_bounds = array<i64: 8, 16>}, {pipeline_mode = #tpu.pipeline_mode<synchronous>, transform_indices = @transform_1, window_bounds = array<i64: 16, 32>}, {pipeline_mode = #tpu.pipeline_mode<synchronous>, transform_indices = @transform_2, window_bounds = array<i64: 1, 32>}, {pipeline_mode = #tpu.pipeline_mode<synchronous>, transform_indices = @transform_3, window_bounds = array<i64: 32, 32>}, {pipeline_mode = #tpu.pipeline_mode<synchronous>, transform_indices = @transform_4, window_bounds = array<i64: 1, 32>}, {pipeline_mode = #tpu.pipeline_mode<synchronous>, transform_indices = @transform_5, window_bounds = array<i64: 32, 128>}, {pipeline_mode = #tpu.pipeline_mode<synchronous>, transform_indices = @transform_6, window_bounds = array<i64: 1, 128>}, {transform_indices = @transform_7, window_bounds = array<i64: 8, 128>}]} {
    %c0 = arith.constant 0 : index
    %c0_0 = arith.constant 0 : index
    %0 = vector.load %arg1[%c0, %c0_0] : memref<8x16xf32, #tpu.memory_space<vmem>>, vector<8x16xf32>
    %c0_1 = arith.constant 0 : index
    %c0_2 = arith.constant 0 : index
    %1 = vector.load %arg2[%c0_1, %c0_2] : memref<16x32xf32, #tpu.memory_space<vmem>>, vector<16x32xf32>
    %cst = arith.constant dense<0.000000e+00> : vector<8x32xf32>
    %2 = tpu.matmul %0, %1, %cst {dimension_numbers = #tpu.dot_dimension_numbers<[1], [0], [0], [1], [0, 0, 1, 1], [], []>} : vector<8x16xf32>, vector<16x32xf32>, vector<8x32xf32> -> vector<8x32xf32>
    %c0_3 = arith.constant 0 : index
    %c0_4 = arith.constant 0 : index
    %3 = vector.load %arg3[%c0_3, %c0_4] : memref<1x32xf32, #tpu.memory_space<vmem>>, vector<1x32xf32>
    %4 = vector.broadcast %3 : vector<1x32xf32> to vector<8x32xf32>
    %5 = arith.addf %2, %4 : vector<8x32xf32>
    %cst_5 = arith.constant 0.000000e+00 : f32
    %6 = vector.broadcast %cst_5 : f32 to vector<8x32xf32>
    %7 = arith.maximumf %5, %6 : vector<8x32xf32>
    %c0_6 = arith.constant 0 : index
    %c0_7 = arith.constant 0 : index
    %8 = vector.load %arg4[%c0_6, %c0_7] : memref<32x32xf32, #tpu.memory_space<vmem>>, vector<32x32xf32>
    %cst_8 = arith.constant dense<0.000000e+00> : vector<8x32xf32>
    %9 = tpu.matmul %7, %8, %cst_8 {dimension_numbers = #tpu.dot_dimension_numbers<[1], [0], [0], [1], [0, 0, 1, 1], [], []>} : vector<8x32xf32>, vector<32x32xf32>, vector<8x32xf32> -> vector<8x32xf32>
    %c0_9 = arith.constant 0 : index
    %c0_10 = arith.constant 0 : index
    %10 = vector.load %arg5[%c0_9, %c0_10] : memref<1x32xf32, #tpu.memory_space<vmem>>, vector<1x32xf32>
    %11 = vector.broadcast %10 : vector<1x32xf32> to vector<8x32xf32>
    %12 = arith.addf %9, %11 : vector<8x32xf32>
    %cst_11 = arith.constant 0.000000e+00 : f32
    %13 = vector.broadcast %cst_11 : f32 to vector<8x32xf32>
    %14 = arith.maximumf %12, %13 : vector<8x32xf32>
    %c0_12 = arith.constant 0 : index
    %c0_13 = arith.constant 0 : index
    %15 = vector.load %arg6[%c0_12, %c0_13] : memref<32x128xf32, #tpu.memory_space<vmem>>, vector<32x128xf32>
    %cst_14 = arith.constant dense<0.000000e+00> : vector<8x128xf32>
    %16 = tpu.matmul %14, %15, %cst_14 {dimension_numbers = #tpu.dot_dimension_numbers<[1], [0], [0], [1], [0, 0, 1, 1], [], []>} : vector<8x32xf32>, vector<32x128xf32>, vector<8x128xf32> -> vector<8x128xf32>
    %c0_15 = arith.constant 0 : index
    %c0_16 = arith.constant 0 : index
    %17 = vector.load %arg7[%c0_15, %c0_16] : memref<1x128xf32, #tpu.memory_space<vmem>>, vector<1x128xf32>
    %18 = vector.broadcast %17 : vector<1x128xf32> to vector<8x128xf32>
    %19 = arith.addf %16, %18 : vector<8x128xf32>
    %c0_17 = arith.constant 0 : index
    %c0_18 = arith.constant 0 : index
    %20 = vector.load %arg8[%c0_17, %c0_18] : memref<8x128xf32, #tpu.memory_space<vmem>>, vector<8x128xf32>
    tpu.vector_store %arg8[%c0_17, %c0_18], %19 {strides = array<i32>} : memref<8x128xf32, #tpu.memory_space<vmem>>, vector<8x128xf32>,
    return
  }
  func.func @transform_0(%arg0: i32) -> (i32, i32) {
    %c0_i32 = arith.constant 0 : i32
    %c0_i32_0 = arith.constant 0 : i32
    return %arg0, %c0_i32 : i32, i32
  }
  func.func @transform_1(%arg0: i32) -> (i32, i32) {
    %c0_i32 = arith.constant 0 : i32
    %c0_i32_0 = arith.constant 0 : i32
    %c0_i32_1 = arith.constant 0 : i32
    return %c0_i32, %c0_i32_0 : i32, i32
  }
  func.func @transform_2(%arg0: i32) -> (i32, i32) {
    %c0_i32 = arith.constant 0 : i32
    %c0_i32_0 = arith.constant 0 : i32
    %c0_i32_1 = arith.constant 0 : i32
    return %c0_i32, %c0_i32_0 : i32, i32
  }
  func.func @transform_3(%arg0: i32) -> (i32, i32) {
    %c0_i32 = arith.constant 0 : i32
    %c0_i32_0 = arith.constant 0 : i32
    %c0_i32_1 = arith.constant 0 : i32
    return %c0_i32, %c0_i32_0 : i32, i32
  }
  func.func @transform_4(%arg0: i32) -> (i32, i32) {
    %c0_i32 = arith.constant 0 : i32
    %c0_i32_0 = arith.constant 0 : i32
    %c0_i32_1 = arith.constant 0 : i32
    return %c0_i32, %c0_i32_0 : i32, i32
  }
  func.func @transform_5(%arg0: i32) -> (i32, i32) {
    %c0_i32 = arith.constant 0 : i32
    %c0_i32_0 = arith.constant 0 : i32
    %c0_i32_1 = arith.constant 0 : i32
    return %c0_i32, %c0_i32_0 : i32, i32
  }
  func.func @transform_6(%arg0: i32) -> (i32, i32) {
    %c0_i32 = arith.constant 0 : i32
    %c0_i32_0 = arith.constant 0 : i32
    %c0_i32_1 = arith.constant 0 : i32
    return %c0_i32, %c0_i32_0 : i32, i32
  }
  func.func @transform_7(%arg0: i32) -> (i32, i32) {
    %c0_i32 = arith.constant 0 : i32
    %c0_i32_0 = arith.constant 0 : i32
    return %arg0, %c0_i32 : i32, i32
  }
}

</mosaic_0001>

<bundles_post_ra>
// kernel: dqn_forward.1
= control target key start
LH: loop header
LB: loop body
LE: loop exit
PB: predicated region body
PF: predicated region fallthrough
CT: control target
= control target key end

     0   :  { %v352_v0 = vmov 0.0|0.0   ;;  %vm353_vm0 = vmmov 0   ;;  %v354_v3 = vmov 0.0   ;;  %vm36_vm1 = vcmask 130048   ;;  %s443_s1 = inlined_call_operand.vmem [shape: f32[16,32], index: 1, kind: input, shape index: {}]   ;;  %s444_s3 = inlined_call_operand.vmem [shape: f32[32,32], index: 3, kind: input, shape index: {}]   ;;  %s445_s0 = inlined_call_operand.vmem [shape: f32[8,16], index: 0, kind: input, shape index: {}]   ;;  %s446_s5 = inlined_call_operand.vmem [shape: f32[32,128], index: 5, kind: input, shape index: {}]   ;;  %s447_s2 = inlined_call_operand.vmem [shape: f32[1,32], index: 2, kind: input, shape index: {}]   ;;  %s448_s4 = inlined_call_operand.vmem [shape: f32[1,32], index: 4, kind: input, shape index: {}]   ;;  %s449_s6 = inlined_call_operand.vmem [shape: f32[1,128], index: 6, kind: input, shape index: {}]   ;;  %s450_s7 = inlined_call_operand.vmem [shape: f32[8,128], index: 7, kind: output, shape index: {}]  }
   0x1   :  { %334 = vmatprep.subr.bf16.mxu0 %v352_v0  ;;  %v27_v1 = vld [vmem:[%s443_s1] sm:$0xff]  ;;  %v28_v2 = vld [vmem:[%s443_s1 + $0x8] sm:$0xff]  ;;  %309 = vmatprep.mubr.msk.f32.mxu0 %vm353_vm0, %v354_v3  ;;  %v113_v9 = vld [vmem:[%s444_s3 + $0x10] sm:$0xff]  ;;  %vm122_vm2 = vcmask 261120  }
   0x2   :  { %v335_v4 = vpack.c.bf16 %v28_v2, %v27_v1  ;;  %337 = vmatprep.subr.bf16.mxu1 %v352_v0  ;;  %v111_v5 = vld [vmem:[%s444_s3] sm:$0xff]  ;;  %v112_v6 = vld [vmem:[%s444_s3 + $0x8] sm:$0xff]  ;;  %320 = vmatprep.mubr.msk.f32.mxu1 %vm353_vm0, %v354_v3  ;;  %v114_v10 = vld [vmem:[%s444_s3 + $0x18] sm:$0xff] }
   0x3   :  { %v338_v7 = vpack.c.bf16 %v112_v6, %v111_v5  ;;  %v26_v8 = vld [vmem:[%s445_s0] sm:$0xff]  ;;  %v341_v11 = vpack.c.bf16 %v114_v10, %v113_v9  ;;  %v198_v13 = vld [vmem:[%s446_s5 + $0x8] sm:$0xff]  ;;  %v199_v20 = vld [vmem:[%s446_s5 + $0x10] sm:$0xff] }
   0x4   :  { %336 = vmatpush3.bf16.msra.mxu0 %v335_v4  ;;  %v197_v12 = vld [vmem:[%s446_s5] sm:$0xff]  ;;  %v200_v21 = vld [vmem:[%s446_s5 + $0x18] sm:$0xff] }
   0x5   :  { %339 = vmatpush3.bf16.msra.mxu1 %v338_v7  ;;  %343 = vmatprep.subr.bf16.mxu0 %v352_v0  ;;  %v344_v14 = vpack.c.bf16 %v198_v13, %v197_v12  ;;  %v286_v15 = vld [vmem:[%s447_s2] ss:$0 sm:$0xff]  ;;  %v347_v22 = vpack.c.bf16 %v200_v21, %v199_v20 }
   0x6   :  { %340 = vmatprep.subr.bf16.mxu1 %v352_v0  ;;  %v288_v23 = vld [vmem:[%s448_s4] ss:$0 sm:$0xff] }
   0x7   :  { %310 = vmatmul.mubr.msk.f32.vlgmr.msra.gmra.mrb[0].mxu0 %vm36_vm1, %v26_v8  ;;  %v290_v28 = vld [vmem:[%s449_s6] ss:$0 sm:$0xff] }
   0x8   :  { %331 = vmatprep.mubr.msk.f32.mxu0 %vm353_vm0, %v354_v3  ;;  %345 = vmatpush3.bf16.msra.mxu0 %v344_v14 }
   0x9   :  { %342 = vmatpush3.bf16.msra.mxu1 %v341_v11  ;;  %346 = vmatprep.subr.bf16.mxu0 %v352_v0 }
   0xc   :  { %348 = vmatpush3.bf16.msra.mxu0 %v347_v22 }
  0xda   :  { %v106_v16 = vpop.f32.mrb[0].mxu0 }
  0xdb   :  { %v107_v17 = vadd.f32 %v286_v15, %v106_v16  ;;  %v311_v18 = vpop.f32.mrb[1].mxu0 }
  0xdd   :  { %v110_v19 = vmax.f32 %v107_v17, 0.0 }
  0xdf   :  { %321 = vmatmul.mubr.msk.f32.vlgmr.msra.gmra.mrb[0].mxu1 %vm122_vm2, %v110_v19 }
 0x1b2   :  { %v192_v24 = vpop.f32.mrb[0].mxu1 }
 0x1b3   :  { %v193_v25 = vadd.f32 %v288_v23, %v192_v24  ;;  %v322_v26 = vpop.f32.mrb[1].mxu1 }
 0x1b5   :  { %v196_v27 = vmax.f32 %v193_v25, 0.0 }
 0x1b7   :  { %332 = vmatmul.mubr.msk.f32.vlgmr.msra.gmra.mrb[2].mxu0 %vm122_vm2, %v196_v27 }
 0x28a   :  { %v277_v29 = vpop.f32.mrb[2].mxu0 }
 0x28b   :  { %v278_v30 = vadd.f32 %v290_v28, %v277_v29  ;;  %v333_v31 = vpop.f32.mrb[3].mxu0 }
 0x28d   :  { %281 = vst [vmem:[%s450_s7] sm:$0xff] %v278_v30 }

</bundles_post_ra>
